<compile_context>
chip_gen: v7x
topology: tpu7x:2x2x1
jax: 0.10.0
libtpu: 0.0.40
codegen_flags: <defaults>
</compile_context>

<pallas_src>
import jax
import jax.numpy as jnp
from jax.experimental import pallas as pl
from jax.experimental.pallas import tpu as pltpu

LEAKY_SLOPE = 0.01  # torch.nn.LeakyReLU default negative_slope


def _leaky_relu(x):
    # max(x, slope*x) == LeakyReLU(x) for 0 < slope < 1.
    return jnp.maximum(x, LEAKY_SLOPE * x)


def _round_up(x, m):
    return (x + m - 1) // m * m


def _pad2(x, rows, cols):
    r, c = x.shape
    return jnp.pad(x, ((0, rows - r), (0, cols - c)))


def predictor_ffn_kernel(a_ref, b_ref,
                         w1a_ref, w1b_ref, w1d_ref, b1_ref,
                         w2_ref, b2_ref,
                         w3_ref, b3_ref,
                         o_ref):
    """Fused feature-build + 3-layer MLP on one batch tile.

    a_ref, b_ref : [TB, Hp]  bf16  pooler outputs of text_a / text_b (padded)
    w1a/w1b/w1d  : [Hp, Hp]  bf16  row-blocks of W1 for a, b, |a-b|
    b1_ref       : [1, Hp]   f32
    w2_ref       : [Hp, H2p] bf16,  b2_ref: [1, H2p] f32
    w3_ref       : [H2p,OUTp] bf16, b3_ref: [1, OUTp] f32
    o_ref        : [TB, OUTp] bf16 (lane-dense; real logits live in [:, :3])
    """
    a = a_ref[...]
    b = b_ref[...]
    d = jnp.abs(a - b)  # bf16, same precision as the pre-dot cast before

    # data_p = cat([a, b, |a-b|]) @ W1  ==  a@W1a + b@W1b + d@W1d
    # Running f32 accumulator keeps one [TB, Hp] live value instead of three
    # MXU partials plus the sum.
    h1 = jnp.dot(a, w1a_ref[...], preferred_element_type=jnp.float32)
    h1 = h1 + jnp.dot(b, w1b_ref[...], preferred_element_type=jnp.float32)
    h1 = h1 + jnp.dot(d, w1d_ref[...], preferred_element_type=jnp.float32)
    h1 = h1 + b1_ref[...]
    h1 = _leaky_relu(h1)

    h2 = jnp.dot(h1.astype(jnp.bfloat16), w2_ref[...],
                 preferred_element_type=jnp.float32) + b2_ref[...]
    h2 = _leaky_relu(h2)

    out = jnp.dot(h2.astype(jnp.bfloat16), w3_ref[...],
                  preferred_element_type=jnp.float32) + b3_ref[...]
    o_ref[...] = out.astype(o_ref.dtype)


def predictor_model_forward(pooled_a, pooled_b, params, *, block_b=512):
    """JAX wrapper around the Pallas kernel.

    pooled_a, pooled_b : [B, H] float32 pooler outputs.
    params             : dict with w1 [3H,H], b1 [1,H], w2 [H,H//2],
                         b2 [1,H//2], w3 [H//2,3], b3 [1,3].
    Returns            : [B, 3] float32 logits.
    """
    B, H = pooled_a.shape
    H2 = params["w2"].shape[1]

    # Lane-dense padded sizes.
    Hp = _round_up(H, 128)
    H2p = _round_up(H2, 128)
    OUTp = _round_up(3, 128)

    # Batch tiling: bf16 activations pack 16 rows per sublane tile, so keep
    # the tile (and padded batch) a multiple of 16.
    Bp0 = _round_up(B, 16)
    TB = min(_round_up(block_b, 16), Bp0)
    Bp = _round_up(Bp0, TB)
    n_tiles = Bp // TB

    # bf16 activation inputs (halves the dominant per-row HBM stream).
    a_p = _pad2(pooled_a.astype(jnp.bfloat16), Bp, Hp)
    b_p = _pad2(pooled_b.astype(jnp.bfloat16), Bp, Hp)

    # bf16 weights (halves weight DMA, native bf16 MXU); f32 biases.
    w1 = params["w1"].astype(jnp.bfloat16)
    w1a = _pad2(w1[0:H], Hp, Hp)
    w1b = _pad2(w1[H:2 * H], Hp, Hp)
    w1d = _pad2(w1[2 * H:3 * H], Hp, Hp)
    b1 = _pad2(params["b1"].astype(jnp.float32), 1, Hp)
    w2 = _pad2(params["w2"].astype(jnp.bfloat16), Hp, H2p)
    b2 = _pad2(params["b2"].astype(jnp.float32), 1, H2p)
    w3 = _pad2(params["w3"].astype(jnp.bfloat16), H2p, OUTp)
    b3 = _pad2(params["b3"].astype(jnp.float32), 1, OUTp)

    grid = (n_tiles,)

    def act_map(i):
        return (i, 0)

    def const_map(i):
        return (0, 0)

    # Grid-invariant blocks: single buffer (no point double-buffering data
    # that is never refetched) — halves resident weight VMEM.
    resident = pl.Buffered(1)

    in_specs = [
        pl.BlockSpec((TB, Hp), act_map),                              # a tile
        pl.BlockSpec((TB, Hp), act_map),                              # b tile
        pl.BlockSpec((Hp, Hp), const_map, pipeline_mode=resident),    # w1a
        pl.BlockSpec((Hp, Hp), const_map, pipeline_mode=resident),    # w1b
        pl.BlockSpec((Hp, Hp), const_map, pipeline_mode=resident),    # w1d
        pl.BlockSpec((1, Hp), const_map, pipeline_mode=resident),     # b1
        pl.BlockSpec((Hp, H2p), const_map, pipeline_mode=resident),   # w2
        pl.BlockSpec((1, H2p), const_map, pipeline_mode=resident),    # b2
        pl.BlockSpec((H2p, OUTp), const_map, pipeline_mode=resident), # w3
        pl.BlockSpec((1, OUTp), const_map, pipeline_mode=resident),   # b3
    ]
    out_spec = pl.BlockSpec((TB, OUTp), act_map)

    # Actual VMEM footprint (+ headroom), never the full physical VMEM.
    weight_bytes = (3 * Hp * Hp + Hp * H2p + H2p * OUTp) * 2   # bf16, 1 buf
    bias_bytes = (Hp + H2p + OUTp) * 4                         # f32, 1 buf
    act_bytes = 2 * TB * Hp * 2 * 2                            # bf16, 2 bufs
    out_bytes = TB * OUTp * 2 * 2                              # bf16, 2 bufs
    vmem_need = weight_bytes + bias_bytes + act_bytes + out_bytes
    vmem_limit = int(min(32 * 1024 * 1024,
                         max(vmem_need + 4 * 1024 * 1024, 8 * 1024 * 1024)))

    # Megacore: only shard the batch grid when there is >= 2 tiles; otherwise
    # duplicating the weight DMA per core just doubles HBM traffic.
    semantics = ("parallel",) if n_tiles >= 2 else ("arbitrary",)

    flops = 2 * Bp * (3 * Hp * Hp + Hp * H2p + H2p * OUTp)
    bytes_accessed = (
        (3 * Hp * Hp + Hp * H2p + H2p * OUTp) * 2      # bf16 weights
        + (Hp + H2p + OUTp) * 4                        # f32 biases
        + 2 * Bp * Hp * 2                              # bf16 activations in
        + Bp * OUTp * 2)                               # bf16 output

    out_padded = pl.pallas_call(
        predictor_ffn_kernel,
        out_shape=jax.ShapeDtypeStruct((Bp, OUTp), jnp.bfloat16),
        grid=grid,
        in_specs=in_specs,
        out_specs=out_spec,
        compiler_params=pltpu.CompilerParams(
            dimension_semantics=semantics,
            vmem_limit_bytes=vmem_limit),
        cost_estimate=pl.CostEstimate(
            flops=flops, transcendentals=0, bytes_accessed=bytes_accessed),
    )(a_p, b_p, w1a, w1b, w1d, b1, w2, b2, w3, b3)

    return out_padded[:B, :3].astype(jnp.float32)


def init_params(hidden_size, key):
    """Deterministic init mimicking nn.Linear default (U(-1/sqrt(fan_in), +))."""
    H = hidden_size
    k1, k2, k3, k4, k5, k6 = jax.random.split(key, 6)

    def lin(kw, kb, fan_in, fan_out):
        bound = 1.0 / jnp.sqrt(jnp.float32(fan_in))
        w = jax.random.uniform(kw, (fan_in, fan_out), jnp.float32, -bound, bound)
        b = jax.random.uniform(kb, (1, fan_out), jnp.float32, -bound, bound)
        return w, b

    w1, b1 = lin(k1, k2, 3 * H, H)
    w2, b2 = lin(k3, k4, H, H // 2)
    w3, b3 = lin(k5, k6, H // 2, 3)
    return dict(w1=w1, b1=b1, w2=w2, b2=b2, w3=w3, b3=b3)


def reference_forward(pooled_a, pooled_b, params):
    """Pure-JAX f32 reference of the same forward pass."""
    feat = jnp.concatenate(
        [pooled_a, pooled_b, jnp.abs(pooled_a - pooled_b)], axis=-1)
    h1 = _leaky_relu(feat @ params["w1"] + params["b1"])
    h2 = _leaky_relu(h1 @ params["w2"] + params["b2"])
    return h2 @ params["w3"] + params["b3"]


if __name__ == "__main__":
    B = 8       # batch
    H = 32      # hidden_size (real BERT would be 768; kept small per spec)

    key = jax.random.PRNGKey(0)
    ka, kb, kp = jax.random.split(key, 3)

    # Stand-ins for BertModel(...).pooler_output of text_a / text_b.
    pooled_a = jax.random.normal(ka, (B, H), jnp.float32)
    pooled_b = jax.random.normal(kb, (B, H), jnp.float32)
    params = init_params(H, kp)

    out = predictor_model_forward(pooled_a, pooled_b, params)
    out = jax.block_until_ready(out)

    ref = reference_forward(pooled_a, pooled_b, params)
    assert out.shape == (B, 3)
    # bf16 weights/activations/output inside the kernel -> compare against the
    # f32 reference with a bf16-appropriate tolerance.
    assert jnp.allclose(out, ref, atol=3e-2, rtol=3e-2), (
        "mismatch vs reference: max abs err = "
        f"{float(jnp.max(jnp.abs(out - ref)))}")

    print("KERNEL_OK")
</pallas_src>

<mosaic_0001>
module attributes {stable_mosaic.version = 11 : i64} {
  func.func @predictor_ffn_kernel(%arg0: i32, %arg1: memref<16x128xbf16, #tpu.memory_space<vmem>>, %arg2: memref<16x128xbf16, #tpu.memory_space<vmem>>, %arg3: memref<128x128xbf16, #tpu.memory_space<vmem>>, %arg4: memref<128x128xbf16, #tpu.memory_space<vmem>>, %arg5: memref<128x128xbf16, #tpu.memory_space<vmem>>, %arg6: memref<1x128xf32, #tpu.memory_space<vmem>>, %arg7: memref<128x128xbf16, #tpu.memory_space<vmem>>, %arg8: memref<1x128xf32, #tpu.memory_space<vmem>>, %arg9: memref<128x128xbf16, #tpu.memory_space<vmem>>, %arg10: memref<1x128xf32, #tpu.memory_space<vmem>>, %arg11: memref<16x128xbf16, #tpu.memory_space<vmem>>) attributes {dimension_semantics = [#tpu.dimension_semantics<arbitrary>], iteration_bounds = array<i64: 1>, scalar_prefetch = 0 : i64, scratch_operands = 0 : i64, tpu.core_type = #tpu.core_type<tc>, window_params = [{transform_indices = @transform_0, window_bounds = array<i64: 16, 128>}, {transform_indices = @transform_1, window_bounds = array<i64: 16, 128>}, {pipeline_mode = #tpu.pipeline_mode<synchronous>, transform_indices = @transform_2, window_bounds = array<i64: 128, 128>}, {pipeline_mode = #tpu.pipeline_mode<synchronous>, transform_indices = @transform_3, window_bounds = array<i64: 128, 128>}, {pipeline_mode = #tpu.pipeline_mode<synchronous>, transform_indices = @transform_4, window_bounds = array<i64: 128, 128>}, {pipeline_mode = #tpu.pipeline_mode<synchronous>, transform_indices = @transform_5, window_bounds = array<i64: 1, 128>}, {pipeline_mode = #tpu.pipeline_mode<synchronous>, transform_indices = @transform_6, window_bounds = array<i64: 128, 128>}, {pipeline_mode = #tpu.pipeline_mode<synchronous>, transform_indices = @transform_7, window_bounds = array<i64: 1, 128>}, {pipeline_mode = #tpu.pipeline_mode<synchronous>, transform_indices = @transform_8, window_bounds = array<i64: 128, 128>}, {pipeline_mode = #tpu.pipeline_mode<synchronous>, transform_indices = @transform_9, window_bounds = array<i64: 1, 128>}, {transform_indices = @transform_10, window_bounds = array<i64: 16, 128>}]} {
    %c0 = arith.constant 0 : index
    %c0_0 = arith.constant 0 : index
    %0 = vector.load %arg1[%c0, %c0_0] : memref<16x128xbf16, #tpu.memory_space<vmem>>, vector<16x128xbf16>
    %c0_1 = arith.constant 0 : index
    %c0_2 = arith.constant 0 : index
    %1 = vector.load %arg2[%c0_1, %c0_2] : memref<16x128xbf16, #tpu.memory_space<vmem>>, vector<16x128xbf16>
    %2 = arith.subf %0, %1 : vector<16x128xbf16>
    %3 = math.absf %2 : vector<16x128xbf16>
    %c0_3 = arith.constant 0 : index
    %c0_4 = arith.constant 0 : index
    %4 = vector.load %arg3[%c0_3, %c0_4] : memref<128x128xbf16, #tpu.memory_space<vmem>>, vector<128x128xbf16>
    %cst = arith.constant dense<0.000000e+00> : vector<16x128xf32>
    %5 = tpu.matmul %0, %4, %cst {dimension_numbers = #tpu.dot_dimension_numbers<[1], [0], [0], [1], [0, 0, 1, 1], [], []>} : vector<16x128xbf16>, vector<128x128xbf16>, vector<16x128xf32> -> vector<16x128xf32>
    %c0_5 = arith.constant 0 : index
    %c0_6 = arith.constant 0 : index
    %6 = vector.load %arg4[%c0_5, %c0_6] : memref<128x128xbf16, #tpu.memory_space<vmem>>, vector<128x128xbf16>
    %cst_7 = arith.constant dense<0.000000e+00> : vector<16x128xf32>
    %7 = tpu.matmul %1, %6, %cst_7 {dimension_numbers = #tpu.dot_dimension_numbers<[1], [0], [0], [1], [0, 0, 1, 1], [], []>} : vector<16x128xbf16>, vector<128x128xbf16>, vector<16x128xf32> -> vector<16x128xf32>
    %8 = arith.addf %5, %7 : vector<16x128xf32>
    %c0_8 = arith.constant 0 : index
    %c0_9 = arith.constant 0 : index
    %9 = vector.load %arg5[%c0_8, %c0_9] : memref<128x128xbf16, #tpu.memory_space<vmem>>, vector<128x128xbf16>
    %cst_10 = arith.constant dense<0.000000e+00> : vector<16x128xf32>
    %10 = tpu.matmul %3, %9, %cst_10 {dimension_numbers = #tpu.dot_dimension_numbers<[1], [0], [0], [1], [0, 0, 1, 1], [], []>} : vector<16x128xbf16>, vector<128x128xbf16>, vector<16x128xf32> -> vector<16x128xf32>
    %11 = arith.addf %8, %10 : vector<16x128xf32>
    %c0_11 = arith.constant 0 : index
    %c0_12 = arith.constant 0 : index
    %12 = vector.load %arg6[%c0_11, %c0_12] : memref<1x128xf32, #tpu.memory_space<vmem>>, vector<1x128xf32>
    %13 = vector.broadcast %12 : vector<1x128xf32> to vector<16x128xf32>
    %14 = arith.addf %11, %13 : vector<16x128xf32>
    %cst_13 = arith.constant 0.00999999977 : f32
    %15 = vector.broadcast %cst_13 : f32 to vector<16x128xf32>
    %16 = arith.mulf %15, %14 : vector<16x128xf32>
    %17 = arith.maximumf %14, %16 : vector<16x128xf32>
    %18 = arith.truncf %17 : vector<16x128xf32> to vector<16x128xbf16>
    %c0_14 = arith.constant 0 : index
    %c0_15 = arith.constant 0 : index
    %19 = vector.load %arg7[%c0_14, %c0_15] : memref<128x128xbf16, #tpu.memory_space<vmem>>, vector<128x128xbf16>
    %cst_16 = arith.constant dense<0.000000e+00> : vector<16x128xf32>
    %20 = tpu.matmul %18, %19, %cst_16 {dimension_numbers = #tpu.dot_dimension_numbers<[1], [0], [0], [1], [0, 0, 1, 1], [], []>} : vector<16x128xbf16>, vector<128x128xbf16>, vector<16x128xf32> -> vector<16x128xf32>
    %c0_17 = arith.constant 0 : index
    %c0_18 = arith.constant 0 : index
    %21 = vector.load %arg8[%c0_17, %c0_18] : memref<1x128xf32, #tpu.memory_space<vmem>>, vector<1x128xf32>
    %22 = vector.broadcast %21 : vector<1x128xf32> to vector<16x128xf32>
    %23 = arith.addf %20, %22 : vector<16x128xf32>
    %cst_19 = arith.constant 0.00999999977 : f32
    %24 = vector.broadcast %cst_19 : f32 to vector<16x128xf32>
    %25 = arith.mulf %24, %23 : vector<16x128xf32>
    %26 = arith.maximumf %23, %25 : vector<16x128xf32>
    %27 = arith.truncf %26 : vector<16x128xf32> to vector<16x128xbf16>
    %c0_20 = arith.constant 0 : index
    %c0_21 = arith.constant 0 : index
    %28 = vector.load %arg9[%c0_20, %c0_21] : memref<128x128xbf16, #tpu.memory_space<vmem>>, vector<128x128xbf16>
    %cst_22 = arith.constant dense<0.000000e+00> : vector<16x128xf32>
    %29 = tpu.matmul %27, %28, %cst_22 {dimension_numbers = #tpu.dot_dimension_numbers<[1], [0], [0], [1], [0, 0, 1, 1], [], []>} : vector<16x128xbf16>, vector<128x128xbf16>, vector<16x128xf32> -> vector<16x128xf32>
    %c0_23 = arith.constant 0 : index
    %c0_24 = arith.constant 0 : index
    %30 = vector.load %arg10[%c0_23, %c0_24] : memref<1x128xf32, #tpu.memory_space<vmem>>, vector<1x128xf32>
    %31 = vector.broadcast %30 : vector<1x128xf32> to vector<16x128xf32>
    %32 = arith.addf %29, %31 : vector<16x128xf32>
    %33 = arith.truncf %32 : vector<16x128xf32> to vector<16x128xbf16>
    %c0_25 = arith.constant 0 : index
    %c0_26 = arith.constant 0 : index
    %34 = vector.load %arg11[%c0_25, %c0_26] : memref<16x128xbf16, #tpu.memory_space<vmem>>, vector<16x128xbf16>
    tpu.vector_store %arg11[%c0_25, %c0_26], %33 {strides = array<i32>} : memref<16x128xbf16, #tpu.memory_space<vmem>>, vector<16x128xbf16>,
    return
  }
  func.func @transform_0(%arg0: i32) -> (i32, i32) {
    %c0_i32 = arith.constant 0 : i32
    %c0_i32_0 = arith.constant 0 : i32
    return %arg0, %c0_i32 : i32, i32
  }
  func.func @transform_1(%arg0: i32) -> (i32, i32) {
    %c0_i32 = arith.constant 0 : i32
    %c0_i32_0 = arith.constant 0 : i32
    return %arg0, %c0_i32 : i32, i32
  }
  func.func @transform_2(%arg0: i32) -> (i32, i32) {
    %c0_i32 = arith.constant 0 : i32
    %c0_i32_0 = arith.constant 0 : i32
    %c0_i32_1 = arith.constant 0 : i32
    return %c0_i32, %c0_i32_0 : i32, i32
  }
  func.func @transform_3(%arg0: i32) -> (i32, i32) {
    %c0_i32 = arith.constant 0 : i32
    %c0_i32_0 = arith.constant 0 : i32
    %c0_i32_1 = arith.constant 0 : i32
    return %c0_i32, %c0_i32_0 : i32, i32
  }
  func.func @transform_4(%arg0: i32) -> (i32, i32) {
    %c0_i32 = arith.constant 0 : i32
    %c0_i32_0 = arith.constant 0 : i32
    %c0_i32_1 = arith.constant 0 : i32
    return %c0_i32, %c0_i32_0 : i32, i32
  }
  func.func @transform_5(%arg0: i32) -> (i32, i32) {
    %c0_i32 = arith.constant 0 : i32
    %c0_i32_0 = arith.constant 0 : i32
    %c0_i32_1 = arith.constant 0 : i32
    return %c0_i32, %c0_i32_0 : i32, i32
  }
  func.func @transform_6(%arg0: i32) -> (i32, i32) {
    %c0_i32 = arith.constant 0 : i32
    %c0_i32_0 = arith.constant 0 : i32
    %c0_i32_1 = arith.constant 0 : i32
    return %c0_i32, %c0_i32_0 : i32, i32
  }
  func.func @transform_7(%arg0: i32) -> (i32, i32) {
    %c0_i32 = arith.constant 0 : i32
    %c0_i32_0 = arith.constant 0 : i32
    %c0_i32_1 = arith.constant 0 : i32
    return %c0_i32, %c0_i32_0 : i32, i32
  }
  func.func @transform_8(%arg0: i32) -> (i32, i32) {
    %c0_i32 = arith.constant 0 : i32
    %c0_i32_0 = arith.constant 0 : i32
    %c0_i32_1 = arith.constant 0 : i32
    return %c0_i32, %c0_i32_0 : i32, i32
  }
  func.func @transform_9(%arg0: i32) -> (i32, i32) {
    %c0_i32 = arith.constant 0 : i32
    %c0_i32_0 = arith.constant 0 : i32
    %c0_i32_1 = arith.constant 0 : i32
    return %c0_i32, %c0_i32_0 : i32, i32
  }
  func.func @transform_10(%arg0: i32) -> (i32, i32) {
    %c0_i32 = arith.constant 0 : i32
    %c0_i32_0 = arith.constant 0 : i32
    return %arg0, %c0_i32 : i32, i32
  }
}

</mosaic_0001>

<bundles_post_ra>
// kernel: tpu_custom_call.1
= control target key start
LH: loop header
LB: loop body
LE: loop exit
PB: predicated region body
PF: predicated region fallthrough
CT: control target
= control target key end

     0   :  { %15 = vsyncpa [#allocation3], 0  ;;  %s1455_s0 = inlined_call_operand.hbm [shape: bf16[16,128], index: 0, kind: input, shape index: {}]   ;;  %s1456_s1 = inlined_call_operand.hbm [shape: bf16[16,128], index: 1, kind: input, shape index: {}]   ;;  %s1457_s2 = inlined_call_operand.hbm [shape: bf16[128,128], index: 2, kind: input, shape index: {}]   ;;  %s1458_s3 = inlined_call_operand.hbm [shape: bf16[128,128], index: 3, kind: input, shape index: {}]   ;;  %s1459_s4 = inlined_call_operand.hbm [shape: bf16[128,128], index: 4, kind: input, shape index: {}]   ;;  %s1460_s5 = inlined_call_operand.vmem [shape: f32[1,128], index: 5, kind: input, shape index: {}]   ;;  %s1461_s6 = inlined_call_operand.hbm [shape: bf16[128,128], index: 6, kind: input, shape index: {}]   ;;  %s1462_s7 = inlined_call_operand.vmem [shape: f32[1,128], index: 7, kind: input, shape index: {}]   ;;  %s1463_s8 = inlined_call_operand.hbm [shape: bf16[128,128], index: 8, kind: input, shape index: {}]   ;;  %s1464_s9 = inlined_call_operand.vmem [shape: f32[1,128], index: 9, kind: input, shape index: {}]   ;;  %s1465_s10 = inlined_call_operand.hbm [shape: bf16[16,128], index: 10, kind: output, shape index: {}]  }
   0x1   :  { %16 = vsyncpa [#allocation6], 0 }
   0x2   :  { %17 = vsyncpa [#allocation9], 0 }
   0x3   :  { %18 = vsyncpa [#allocation12], 0 }
   0x4   :  { %19 = vsyncpa [#allocation4], 0  ;;  %s1188_s13 = smov [#allocation5]   ;;  %s1189_s15 = smov [#allocation8]  }
   0x5   :  { %s37_s14 = sshll.u32 %s1188_s13, 4  ;;  %s61_s16 = sshll.u32 %s1189_s15, 4  ;;  %s38_s14 = int_to_ptr.vmem [resolvable:$true] %s37_s14  ;;  %s1255_s16 = int_to_ptr.vmem [resolvable:$true] %s61_s16 }
   0x6   :  { %s1002_s19 = scalar_lea.hbm %s1456_s1, 128 }
   0x7   :  { %p1003_p0 = scmp.ne.s32.totalorder %s1456_s1, %s1002_s19  ;;  %p1006_p1 = scmp.lt.u32.totalorder %s1002_s19, %s1456_s1 }
   0x9   :  { %p1008_p2 = pnand %p1006_p1, %p1003_p0 }
   0xb   :  { %1011 = shalt.err (!%p1008_p2)
}
   0xc   :  { %s1012_s24 = scalar_lea.vmem %s38_s14, 128  ;;  %p1017_p4 = scmp.lt.s32.totalorder %s38_s14, %s38_s14 }
   0xd   :  { %p1013_p3 = scmp.ne.s32.totalorder %s38_s14, %s1012_s24  ;;  %p1018_p5 = scmp.lt.s32.totalorder %s1012_s24, %s1012_s24 }
   0xf   :  { %p1019_p6 = por %p1018_p5, %p1017_p4 }
  0x11   :  { %p1020_p7 = pnand %p1019_p6, %p1013_p3 }
  0x13   :  { %1023 = shalt.err (!%p1020_p7)
}
  0x14   :  { %s1190_s25 = smov 64   ;;  %s1191_s26 = smov 4  }
  0x15   :  { %43 = dma.hbm_to_vmem [thread:$0]  %s1456_s1, 128, %s38_s14, [#allocation6], %s1190_s25, %s1190_s25, %s1191_s26  }
  0x16   :  { %s1024_s11 = scalar_lea.hbm %s1458_s3, 1024 }
  0x17   :  { %p1025_p8 = scmp.ne.s32.totalorder %s1458_s3, %s1024_s11  ;;  %p1028_p9 = scmp.lt.u32.totalorder %s1024_s11, %s1458_s3 }
  0x19   :  { %p1030_p10 = pnand %p1028_p9, %p1025_p8 }
  0x1b   :  { %1033 = shalt.err (!%p1030_p10)
}
  0x1c   :  { %s1034_s18 = scalar_lea.vmem %s1255_s16, 1024  ;;  %p1039_p12 = scmp.lt.s32.totalorder %s1255_s16, %s1255_s16 }
  0x1d   :  { %p1035_p11 = scmp.ne.s32.totalorder %s1255_s16, %s1034_s18  ;;  %p1040_p13 = scmp.lt.s32.totalorder %s1034_s18, %s1034_s18 }
  0x1f   :  { %p1041_p0 = por %p1040_p13, %p1039_p12 }
  0x21   :  { %p1042_p1 = pnand %p1041_p0, %p1035_p11 }
  0x23   :  { %1045 = shalt.err (!%p1042_p1)
}
  0x24   :  { %67 = dma.hbm_to_vmem [thread:$0]  %s1458_s3, 1024, %s1255_s16, [#allocation9], %s1190_s25, %s1190_s25, %s1191_s26  }
  0x25   :  { %s1192_s19 = smov [#allocation11]   ;;  %s1193_s21 = smov [#allocation2]  }
  0x26   :  { %s87_s20 = sshll.u32 %s1192_s19, 4  ;;  %s25_s22 = sshll.u32 %s1193_s21, 4  ;;  %s88_s20 = int_to_ptr.vmem [resolvable:$true] %s87_s20  ;;  %s1292_s22 = int_to_ptr.vmem [resolvable:$true] %s25_s22 }
  0x27   :  { %s1046_s27 = scalar_lea.hbm %s1461_s6, 1024 }
  0x28   :  { %p1047_p2 = scmp.ne.s32.totalorder %s1461_s6, %s1046_s27  ;;  %p1050_p3 = scmp.lt.u32.totalorder %s1046_s27, %s1461_s6 }
  0x2a   :  { %p1052_p4 = pnand %p1050_p3, %p1047_p2 }
  0x2c   :  { %1055 = shalt.err (!%p1052_p4)
}
  0x2d   :  { %s1056_s3 = scalar_lea.vmem %s88_s20, 1024  ;;  %p1061_p6 = scmp.lt.s32.totalorder %s88_s20, %s88_s20 }
  0x2e   :  { %p1057_p5 = scmp.ne.s32.totalorder %s88_s20, %s1056_s3  ;;  %p1062_p7 = scmp.lt.s32.totalorder %s1056_s3, %s1056_s3 }
  0x30   :  { %p1063_p8 = por %p1062_p7, %p1061_p6 }
  0x32   :  { %p1064_p9 = pnand %p1063_p8, %p1057_p5 }
  0x34   :  { %1067 = shalt.err (!%p1064_p9)
}
  0x35   :  { %93 = dma.hbm_to_vmem [thread:$0]  %s1461_s6, 1024, %s88_s20, [#allocation12], %s1190_s25, %s1190_s25, %s1191_s26  }
  0x36   :  { %s1068_s17 = scalar_lea.hbm %s1455_s0, 128 }
  0x37   :  { %p1069_p10 = scmp.ne.s32.totalorder %s1455_s0, %s1068_s17  ;;  %p1072_p11 = scmp.lt.u32.totalorder %s1068_s17, %s1455_s0 }
  0x39   :  { %p1074_p12 = pnand %p1072_p11, %p1069_p10 }
  0x3b   :  { %1077 = shalt.err (!%p1074_p12)
}
  0x3c   :  { %s1078_s21 = scalar_lea.vmem %s1292_s22, 128  ;;  %p1083_p0 = scmp.lt.s32.totalorder %s1292_s22, %s1292_s22 }
  0x3d   :  { %p1079_p13 = scmp.ne.s32.totalorder %s1292_s22, %s1078_s21  ;;  %p1084_p1 = scmp.lt.s32.totalorder %s1078_s21, %s1078_s21 }
  0x3f   :  { %p1085_p2 = por %p1084_p1, %p1083_p0 }
  0x41   :  { %p1086_p3 = pnand %p1085_p2, %p1079_p13 }
  0x43   :  { %1089 = shalt.err (!%p1086_p3)
}
  0x44   :  { %31 = dma.hbm_to_vmem [thread:$0]  %s1455_s0, 128, %s1292_s22, [#allocation3], %s1190_s25, %s1190_s25, %s1191_s26  }
  0x45   :  { %s1194_s23 = smov [#allocation7]   ;;  %s1195_s27 = smov [#allocation10]  }
  0x46   :  { %s49_s24 = sshll.u32 %s1194_s23, 4  ;;  %s73_s28 = sshll.u32 %s1195_s27, 4  ;;  %s50_s24 = int_to_ptr.vmem [resolvable:$true] %s49_s24  ;;  %s1329_s28 = int_to_ptr.vmem [resolvable:$true] %s73_s28 }
  0x47   :  { %s1090_s11 = scalar_lea.hbm %s1457_s2, 1024 }
  0x48   :  { %p1091_p4 = scmp.ne.s32.totalorder %s1457_s2, %s1090_s11  ;;  %p1094_p5 = scmp.lt.u32.totalorder %s1090_s11, %s1457_s2 }
  0x4a   :  { %p1096_p6 = pnand %p1094_p5, %p1091_p4 }
  0x4c   :  { %1099 = shalt.err (!%p1096_p6)
}
  0x4d   :  { %s1100_s0 = scalar_lea.vmem %s50_s24, 1024  ;;  %p1105_p8 = scmp.lt.s32.totalorder %s50_s24, %s50_s24 }
  0x4e   :  { %p1101_p7 = scmp.ne.s32.totalorder %s50_s24, %s1100_s0  ;;  %p1106_p9 = scmp.lt.s32.totalorder %s1100_s0, %s1100_s0 }
  0x50   :  { %p1107_p10 = por %p1106_p9, %p1105_p8 }
  0x52   :  { %p1108_p11 = pnand %p1107_p10, %p1101_p7 }
  0x54   :  { %1111 = shalt.err (!%p1108_p11)
}
  0x55   :  { %55 = dma.hbm_to_vmem [thread:$0]  %s1457_s2, 1024, %s50_s24, [#allocation6], %s1190_s25, %s1190_s25, %s1191_s26  }
  0x56   :  { %s1112_s1 = scalar_lea.hbm %s1459_s4, 1024 }
  0x57   :  { %p1113_p12 = scmp.ne.s32.totalorder %s1459_s4, %s1112_s1  ;;  %p1116_p13 = scmp.lt.u32.totalorder %s1112_s1, %s1459_s4 }
  0x59   :  { %p1118_p0 = pnand %p1116_p13, %p1113_p12 }
  0x5b   :  { %1121 = shalt.err (!%p1118_p0)
}
  0x5c   :  { %s1122_s20 = scalar_lea.vmem %s1329_s28, 1024  ;;  %p1127_p2 = scmp.lt.s32.totalorder %s1329_s28, %s1329_s28 }
  0x5d   :  { %p1123_p1 = scmp.ne.s32.totalorder %s1329_s28, %s1122_s20  ;;  %p1128_p3 = scmp.lt.s32.totalorder %s1122_s20, %s1122_s20 }
  0x5f   :  { %p1129_p4 = por %p1128_p3, %p1127_p2 }
  0x61   :  { %p1130_p5 = pnand %p1129_p4, %p1123_p1 }
  0x63   :  { %1133 = shalt.err (!%p1130_p5)
}
  0x64   :  { %79 = dma.hbm_to_vmem [thread:$0]  %s1459_s4, 1024, %s1329_s28, [#allocation9], %s1190_s25, %s1190_s25, %s1191_s26  }
  0x65   :  { %s1196_s24 = smov [#allocation13]   ;;  %s1134_s11 = scalar_lea.hbm %s1463_s8, 1024 }
  0x66   :  { %s101_s27 = sshll.u32 %s1196_s24, 4  ;;  %p1135_p6 = scmp.ne.s32.totalorder %s1463_s8, %s1134_s11  ;;  %s102_s27 = int_to_ptr.vmem [resolvable:$true] %s101_s27 }
  0x67   :  { %p1138_p7 = scmp.lt.u32.totalorder %s1134_s11, %s1463_s8 }
  0x69   :  { %p1140_p8 = pnand %p1138_p7, %p1135_p6 }
  0x6b   :  { %1143 = shalt.err (!%p1140_p8)
}
  0x6c   :  { %s1144_s0 = scalar_lea.vmem %s102_s27, 1024  ;;  %p1149_p10 = scmp.lt.s32.totalorder %s102_s27, %s102_s27 }
  0x6d   :  { %p1145_p9 = scmp.ne.s32.totalorder %s102_s27, %s1144_s0  ;;  %p1150_p11 = scmp.lt.s32.totalorder %s1144_s0, %s1144_s0 }
  0x6f   :  { %p1151_p12 = por %p1150_p11, %p1149_p10 }
  0x71   :  { %p1152_p13 = pnand %p1151_p12, %p1145_p9 }
  0x73   :  { %1155 = shalt.err (!%p1152_p13)
}
  0x74   :  { %107 = dma.hbm_to_vmem [thread:$0]  %s1463_s8, 1024, %s102_s27, [#allocation12], %s1190_s25, %s1190_s25, %s1191_s26  }
  0x75   :  { %1178 = dma.done.wait [#allocation3], 128  }
  0x76   :  { %1179 = vsyncadd [#allocation3], 4294967168 }
  0x77   :  { %1180 = dma.done.wait [#allocation6], 1152  }
  0x78   :  { %1181 = vsyncadd [#allocation6], 4294966144 }
  0x79   :  { %1182 = dma.done.wait [#allocation9], 2048  }
  0x7a   :  { %1183 = vsyncadd [#allocation9], 4294965248 }
  0x7b   :  { %1184 = dma.done.wait [#allocation12], 2048  }
  0x7c   :  { %1185 = vsyncadd [#allocation12], 4294965248  ;;  %v1197_v0 = vmov 0.0   ;;  %vm1198_vm0 = vmmov 0   ;;  %v960_v1 = vld [vmem:[#allocation8] sm:$0xff]   ;;  %v962_v3 = vld [vmem:[#allocation8 + $0x8] sm:$0xff]  }
  0x7d   :  { %848 = vmatprep.subr.bf16.mxu0 %v1197_v0  ;;  %868 = vmatprep.subr.bf16.mxu1 %v1197_v0  ;;  %v961_v2 = vld [vmem:[#allocation7] sm:$0xff]   ;;  %v963_v4 = vld [vmem:[#allocation7 + $0x8] sm:$0xff]   ;;  %v964_v5 = vld [vmem:[#allocation8 + $0x10] sm:$0xff]  }
  0x7e   :  { %864 = vmatprep.mubr.msk.bf16.mxu0 %vm1198_vm0, %v1197_v0  ;;  %884 = vmatprep.mubr.msk.bf16.mxu1 %vm1198_vm0, %v1197_v0  ;;  %v965_v6 = vld [vmem:[#allocation7 + $0x10] sm:$0xff]   ;;  %v966_v7 = vld [vmem:[#allocation8 + $0x18] sm:$0xff]   ;;  %v968_v9 = vld [vmem:[#allocation8 + $0x20] sm:$0xff]  }
  0x7f   :  { %849 = vmatpush3.bf16.msra.mxu0 %v960_v1  ;;  %869 = vmatpush3.bf16.msra.mxu1 %v961_v2  ;;  %v967_v8 = vld [vmem:[#allocation7 + $0x18] sm:$0xff]   ;;  %v969_v10 = vld [vmem:[#allocation7 + $0x20] sm:$0xff]   ;;  %v970_v11 = vld [vmem:[#allocation8 + $0x28] sm:$0xff]  }
  0x80   :  { %850 = vmatprep.subr.bf16.mxu0 %v1197_v0  ;;  %870 = vmatprep.subr.bf16.mxu1 %v1197_v0  ;;  %v971_v12 = vld [vmem:[#allocation7 + $0x28] sm:$0xff]   ;;  %v972_v13 = vld [vmem:[#allocation8 + $0x30] sm:$0xff]   ;;  %v974_v15 = vld [vmem:[#allocation8 + $0x38] sm:$0xff]  }
  0x81   :  { %v973_v14 = vld [vmem:[#allocation7 + $0x30] sm:$0xff]   ;;  %v134_v16 = vld [vmem:[#allocation5] sm:$0xf]  ;;  %v135_v17 = vld [vmem:[#allocation5 + $0x4] sm:$0xf] }
  0x82   :  { %v975_v18 = vld [vmem:[#allocation7 + $0x38] sm:$0xff]   ;;  %v132_v19 = vld [vmem:[#allocation2] sm:$0xf]  ;;  %v133_v20 = vld [vmem:[#allocation2 + $0x4] sm:$0xf]  ;;  %v748_v22 = vcombine.low %v134_v16, %v135_v17 }
  0x83   :  { %851 = vmatpush3.bf16.msra.mxu0 %v962_v3  ;;  %871 = vmatpush3.bf16.msra.mxu1 %v963_v4  ;;  %v978_v21 = vld [vmem:[#allocation10] sm:$0xff]   ;;  %v757_v23 = vcombine.low %v132_v19, %v133_v20  ;;  %v979_v24 = vld [vmem:[#allocation10 + $0x8] sm:$0xff]   ;;  %v980_v25 = vld [vmem:[#allocation10 + $0x10] sm:$0xff]   ;;  %v136_v29 = vsub.bf16 %v132_v19, %v134_v16  ;;  %v137_v30 = vsub.bf16 %v133_v20, %v135_v17 }
  0x84   :  { %852 = vmatprep.subr.bf16.mxu0 %v1197_v0  ;;  %872 = vmatprep.subr.bf16.mxu1 %v1197_v0  ;;  %v981_v26 = vld [vmem:[#allocation10 + $0x18] sm:$0xff]   ;;  %v982_v27 = vld [vmem:[#allocation10 + $0x20] sm:$0xff]   ;;  %v983_v28 = vld [vmem:[#allocation10 + $0x28] sm:$0xff]  }
  0x85   :  { %v984_v31 = vld [vmem:[#allocation10 + $0x30] sm:$0xff]   ;;  %v138_v32 = vand.u32 2147450879, %v136_v29  ;;  %v139_v33 = vand.u32 2147450879, %v137_v30  ;;  %v985_v34 = vld [vmem:[#allocation10 + $0x38] sm:$0xff]  }
  0x86   :  { %v986_v36 = vld [vmem:[#allocation11] sm:$0xff]   ;;  %v987_v37 = vld [vmem:[#allocation11 + $0x8] sm:$0xff]   ;;  %v988_v38 = vld [vmem:[#allocation11 + $0x10] sm:$0xff]  }
  0x87   :  { %853 = vmatpush3.bf16.msra.mxu0 %v964_v5  ;;  %873 = vmatpush3.bf16.msra.mxu1 %v965_v6  ;;  %v766_v35 = vcombine.low %v138_v32, %v139_v33  ;;  %v989_v39 = vld [vmem:[#allocation11 + $0x18] sm:$0xff]   ;;  %v990_v40 = vld [vmem:[#allocation11 + $0x20] sm:$0xff]   ;;  %v991_v41 = vld [vmem:[#allocation11 + $0x28] sm:$0xff]  }
  0x88   :  { %854 = vmatprep.subr.bf16.mxu0 %v1197_v0  ;;  %874 = vmatprep.subr.bf16.mxu1 %v1197_v0  ;;  %v992_v42 = vld [vmem:[#allocation11 + $0x30] sm:$0xff]   ;;  %v993_v43 = vld [vmem:[#allocation11 + $0x38] sm:$0xff]   ;;  %v994_v44 = vld [vmem:[#allocation13] sm:$0xff]  }
  0x89   :  { %v995_v45 = vld [vmem:[#allocation13 + $0x8] sm:$0xff]   ;;  %v996_v46 = vld [vmem:[#allocation13 + $0x10] sm:$0xff]   ;;  %v997_v47 = vld [vmem:[#allocation13 + $0x18] sm:$0xff]  }
  0x8a   :  { %v998_v48 = vld [vmem:[#allocation13 + $0x20] sm:$0xff]   ;;  %v775_v60 = vld [vmem:[%s1460_s5] ss:$0 sm:$0xff] }
  0x8b   :  { %855 = vmatpush3.bf16.msra.mxu0 %v966_v7  ;;  %875 = vmatpush3.bf16.msra.mxu1 %v967_v8 }
  0x8c   :  { %856 = vmatprep.subr.bf16.mxu0 %v1197_v0  ;;  %876 = vmatprep.subr.bf16.mxu1 %v1197_v0 }
  0x8f   :  { %857 = vmatpush3.bf16.msra.mxu0 %v968_v9  ;;  %877 = vmatpush3.bf16.msra.mxu1 %v969_v10  ;;  %v999_v10 = vld [vmem:[#allocation13 + $0x28] sm:$0xff]  }
  0x90   :  { %858 = vmatprep.subr.bf16.mxu0 %v1197_v0  ;;  %878 = vmatprep.subr.bf16.mxu1 %v1197_v0 }
  0x93   :  { %859 = vmatpush3.bf16.msra.mxu0 %v970_v11  ;;  %879 = vmatpush3.bf16.msra.mxu1 %v971_v12  ;;  %v1000_v11 = vld [vmem:[#allocation13 + $0x30] sm:$0xff]   ;;  %v1001_v12 = vld [vmem:[#allocation13 + $0x38] sm:$0xff]  }
  0x94   :  { %860 = vmatprep.subr.bf16.mxu0 %v1197_v0  ;;  %880 = vmatprep.subr.bf16.mxu1 %v1197_v0 }
  0x97   :  { %861 = vmatpush3.bf16.msra.mxu0 %v972_v13  ;;  %881 = vmatpush3.bf16.msra.mxu1 %v973_v14  ;;  %v776_v13 = vld [vmem:[%s1462_s7] ss:$0 sm:$0xff]  ;;  %s1199_s7 = smov [#allocation14]  }
  0x98   :  { %862 = vmatprep.subr.bf16.mxu0 %v1197_v0  ;;  %882 = vmatprep.subr.bf16.mxu1 %v1197_v0  ;;  %s733_s1 = sshll.u32 %s1199_s7, 4  ;;  %s734_s1 = int_to_ptr.vmem [resolvable:$true] %s733_s1 }
  0x99   :  { %s1156_s14 = scalar_lea.vmem %s734_s1, 128  ;;  %p1161_p1 = scmp.lt.s32.totalorder %s734_s1, %s734_s1 }
  0x9a   :  { %p1157_p0 = scmp.ne.s32.totalorder %s734_s1, %s1156_s14  ;;  %p1162_p2 = scmp.lt.s32.totalorder %s1156_s14, %s1156_s14 }
  0x9b   :  { %863 = vmatpush3.bf16.msra.mxu0 %v974_v15  ;;  %883 = vmatpush3.bf16.msra.mxu1 %v975_v18 }
  0x9c   :  { %888 = vmatprep.subr.bf16.mxu0 %v1197_v0  ;;  %908 = vmatprep.subr.bf16.mxu1 %v1197_v0  ;;  %p1163_p3 = por %p1162_p2, %p1161_p1 }
  0x9e   :  { %865 = vmatmul.mubr.bf16.vlgmr.msra.gmra.mrb[0].mxu0 %v748_v22  ;;  %885 = vmatmul.mubr.bf16.vlgmr.msra.gmra.mrb[0].mxu1 %v757_v23  ;;  %p1164_p4 = pnand %p1163_p3, %p1157_p0 }
  0x9f   :  { %889 = vmatpush3.bf16.msra.mxu0 %v978_v21  ;;  %904 = vmatprep.mubr.msk.bf16.mxu0 %vm1198_vm0, %v1197_v0 }
  0xa0   :  { %890 = vmatprep.subr.bf16.mxu0 %v1197_v0  ;;  %924 = vmatprep.mubr.msk.bf16.mxu1 %vm1198_vm0, %v1197_v0 }
  0xa1   :  { %909 = vmatpush3.bf16.msra.mxu1 %v986_v36 }
  0xa2   :  { %910 = vmatprep.subr.bf16.mxu1 %v1197_v0 }
  0xa3   :  { %891 = vmatpush3.bf16.msra.mxu0 %v979_v24 }
  0xa4   :  { %892 = vmatprep.subr.bf16.mxu0 %v1197_v0 }
  0xa5   :  { %911 = vmatpush3.bf16.msra.mxu1 %v987_v37 }
  0xa6   :  { %912 = vmatprep.subr.bf16.mxu1 %v1197_v0 }
  0xa7   :  { %893 = vmatpush3.bf16.msra.mxu0 %v980_v25 }
  0xa8   :  { %894 = vmatprep.subr.bf16.mxu0 %v1197_v0 }
  0xa9   :  { %913 = vmatpush3.bf16.msra.mxu1 %v988_v38 }
  0xaa   :  { %914 = vmatprep.subr.bf16.mxu1 %v1197_v0 }
  0xab   :  { %895 = vmatpush3.bf16.msra.mxu0 %v981_v26 }
  0xac   :  { %896 = vmatprep.subr.bf16.mxu0 %v1197_v0 }
  0xad   :  { %915 = vmatpush3.bf16.msra.mxu1 %v989_v39 }
  0xae   :  { %916 = vmatprep.subr.bf16.mxu1 %v1197_v0 }
  0xaf   :  { %897 = vmatpush3.bf16.msra.mxu0 %v982_v27 }
  0xb0   :  { %898 = vmatprep.subr.bf16.mxu0 %v1197_v0 }
  0xb1   :  { %917 = vmatpush3.bf16.msra.mxu1 %v990_v40 }
  0xb2   :  { %918 = vmatprep.subr.bf16.mxu1 %v1197_v0 }
  0xb3   :  { %899 = vmatpush3.bf16.msra.mxu0 %v983_v28 }
  0xb4   :  { %900 = vmatprep.subr.bf16.mxu0 %v1197_v0 }
  0xb5   :  { %919 = vmatpush3.bf16.msra.mxu1 %v991_v41 }
  0xb6   :  { %920 = vmatprep.subr.bf16.mxu1 %v1197_v0 }
  0xb7   :  { %901 = vmatpush3.bf16.msra.mxu0 %v984_v31 }
  0xb8   :  { %902 = vmatprep.subr.bf16.mxu0 %v1197_v0 }
  0xb9   :  { %921 = vmatpush3.bf16.msra.mxu1 %v992_v42 }
  0xba   :  { %922 = vmatprep.subr.bf16.mxu1 %v1197_v0 }
  0xbb   :  { %903 = vmatpush3.bf16.msra.mxu0 %v985_v34 }
  0xbc   :  { %928 = vmatprep.subr.bf16.mxu0 %v1197_v0 }
  0xbd   :  { %923 = vmatpush3.bf16.msra.mxu1 %v993_v43 }
  0xbe   :  { %905 = vmatmul.mubr.bf16.vlgmr.msra.gmra.mrb[4].mxu0 %v766_v35 }
  0xbf   :  { %944 = vmatprep.mubr.msk.bf16.mxu0 %vm1198_vm0, %v1197_v0  ;;  %929 = vmatpush3.bf16.msra.mxu0 %v994_v44 }
  0xc0   :  { %930 = vmatprep.subr.bf16.mxu0 %v1197_v0 }
  0xc3   :  { %931 = vmatpush3.bf16.msra.mxu0 %v995_v45 }
  0xc4   :  { %932 = vmatprep.subr.bf16.mxu0 %v1197_v0 }
  0xc7   :  { %933 = vmatpush3.bf16.msra.mxu0 %v996_v46 }
  0xc8   :  { %934 = vmatprep.subr.bf16.mxu0 %v1197_v0 }
  0xcb   :  { %935 = vmatpush3.bf16.msra.mxu0 %v997_v47 }
  0xcc   :  { %936 = vmatprep.subr.bf16.mxu0 %v1197_v0 }
  0xcf   :  { %937 = vmatpush3.bf16.msra.mxu0 %v998_v48 }
  0xd0   :  { %938 = vmatprep.subr.bf16.mxu0 %v1197_v0 }
  0xd3   :  { %939 = vmatpush3.bf16.msra.mxu0 %v999_v10 }
  0xd4   :  { %940 = vmatprep.subr.bf16.mxu0 %v1197_v0 }
  0xd7   :  { %941 = vmatpush3.bf16.msra.mxu0 %v1000_v11 }
  0xd8   :  { %942 = vmatprep.subr.bf16.mxu0 %v1197_v0  ;;  %v785_v0 = vld [vmem:[%s1464_s9] ss:$0 sm:$0xff] }
  0xdb   :  { %943 = vmatpush3.bf16.msra.mxu0 %v1001_v12 }
 0x171   :  { %v260_v49 = vpop.f32.mrb[0].mxu0  ;;  %v355_v50 = vpop.f32.mrb[0].mxu1 }
 0x172   :  { %v866_v51 = vpop.f32.mrb[1].mxu0  ;;  %v356_v52 = vadd.f32 %v355_v50, %v260_v49  ;;  %v886_v53 = vpop.f32.mrb[1].mxu1 }
 0x173   :  { %v263_v54 = vpop.f32.mrb[2].mxu0  ;;  %v358_v55 = vpop.f32.mrb[2].mxu1 }
 0x174   :  { %v867_v56 = vpop.f32.mrb[3].mxu0  ;;  %v359_v57 = vadd.f32 %v358_v55, %v263_v54  ;;  %v887_v58 = vpop.f32.mrb[3].mxu1 }
 0x191   :  { %v466_v59 = vpop.f32.mrb[4].mxu0 }
 0x192   :  { %v473_v61 = vadd.f32 %v466_v59, %v356_v52  ;;  %v906_v62 = vpop.f32.mrb[5].mxu0 }
 0x193   :  { %v469_v63 = vpop.f32.mrb[6].mxu0 }
 0x194   :  { %v482_v1 = vadd.f32 %v775_v60, %v473_v61  ;;  %v474_v2 = vadd.f32 %v469_v63, %v359_v57  ;;  %v907_v3 = vpop.f32.mrb[7].mxu0 }
 0x196   :  { %v484_v4 = vmul.f32 0.01, %v482_v1  ;;  %v483_v5 = vadd.f32 %v775_v60, %v474_v2 }
 0x198   :  { %v485_v6 = vmul.f32 0.01, %v483_v5  ;;  %v486_v7 = vmax.f32 %v482_v1, %v484_v4 }
 0x19a   :  { %v487_v8 = vmax.f32 %v483_v5, %v485_v6 }
 0x19c   :  { %v488_v9 = vpack.c.bf16 %v487_v8, %v486_v7 }
 0x19e   :  { %925 = vmatmul.mubr.bf16.vlgmr.msra.gmra.mrb[4].mxu1 %v488_v9 }
 0x271   :  { %v594_v14 = vpop.f32.mrb[4].mxu1 }
 0x272   :  { %v595_v15 = vadd.f32 %v776_v13, %v594_v14  ;;  %v926_v16 = vpop.f32.mrb[5].mxu1 }
 0x273   :  { %v597_v17 = vpop.f32.mrb[6].mxu1 }
 0x274   :  { %v601_v18 = vmul.f32 0.01, %v595_v15  ;;  %v598_v19 = vadd.f32 %v776_v13, %v597_v17  ;;  %v927_v20 = vpop.f32.mrb[7].mxu1 }
 0x276   :  { %v602_v21 = vmul.f32 0.01, %v598_v19  ;;  %v603_v22 = vmax.f32 %v595_v15, %v601_v18 }
 0x278   :  { %v604_v23 = vmax.f32 %v598_v19, %v602_v21 }
 0x27a   :  { %v605_v24 = vpack.c.bf16 %v604_v23, %v603_v22 }
 0x27c   :  { %945 = vmatmul.mubr.bf16.vlgmr.msra.gmra.mrb[8].mxu0 %v605_v24 }
 0x34f   :  { %v711_v25 = vpop.f32.mrb[8].mxu0 }
 0x350   :  { %v946_v26 = vpop.f32.mrb[9].mxu0  ;;  %v712_v28 = vadd.f32 %v785_v0, %v711_v25 }
 0x351   :  { %v714_v27 = vpop.f32.mrb[10].mxu0 }
 0x352   :  { %v715_v29 = vadd.f32 %v785_v0, %v714_v27  ;;  %v947_v30 = vpop.f32.mrb[11].mxu0 }
 0x354   :  { %v801_v31 = vpack.c.bf16 %v715_v29, %v712_v28 }
 0x356   :  { %802 = vst [vmem:[#allocation14] sm:$0xff] %v801_v31  }
 0x357   :  { %1167 = shalt.err (!%p1164_p4)
}
 0x358   :  { %s1168_s21 = scalar_lea.hbm %s1465_s10, 128 }
 0x359   :  { %p1169_p5 = scmp.ne.s32.totalorder %s1465_s10, %s1168_s21  ;;  %p1172_p6 = scmp.lt.u32.totalorder %s1168_s21, %s1465_s10 }
 0x35b   :  { %p1174_p7 = pnand %p1172_p6, %p1169_p5 }
 0x35d   :  { %1177 = shalt.err (!%p1174_p7)
}
 0x35e   :  { %739 = dma.vmem_to_hbm [thread:$0]  %s734_s1, 128, %s1465_s10, [#allocation4], %s1190_s25, %s1190_s25, %s1191_s26  }
 0x35f   :  { %1186 = dma.done.wait [#allocation4], 128  }
 0x360   :  { %1187 = vsyncadd [#allocation4], 4294967168 }
 0x361   :  { %743 = vsyncpa [#allocation3], 1 }
 0x362   :  { %744 = vsyncpa [#allocation6], 1 }
 0x363   :  { %745 = vsyncpa [#allocation9], 1 }
 0x364   :  { %746 = vsyncpa [#allocation12], 1 }
 0x365   :  { %747 = vsyncpa [#allocation4], 1 }

</bundles_post_ra>
